<compile_context>
chip_gen: v5e
topology: v5e:2x2
jax: 0.10.0
libtpu: 0.0.40
codegen_flags: <defaults>
</compile_context>

<pallas_src>
import functools

import jax
import jax.numpy as jnp
from jax.experimental import pallas as pl
from jax.experimental.pallas import tpu as pltpu

LANE = 128
DEFAULT_BLOCK_ROWS = 2048  # (2048,128) f32 tile = 1 MiB. Raise only with an
                           # explicit vmem_limit_bytes (v5e default is 16 MiB).


def _margin_ranking_kernel(pos_ref, neg_ref, out_ref, acc_ref, *,
                           margin, n_valid, block_rows, steps_per_part):
    """Accumulate relu(neg - pos + margin) element-wise; reduce once at the end."""
    p = pl.program_id(0)          # partition (parallel across TCs on v7x)
    i = pl.program_id(1)          # reduction step within the partition

    @pl.when(i == 0)
    def _():
        acc_ref[...] = jnp.zeros_like(acc_ref)

    # Upcast in-kernel only (keeps HBM traffic at the input dtype width).
    pos = pos_ref[...].astype(jnp.float32)
    neg = neg_ref[...].astype(jnp.float32)
    hinge = jnp.maximum(neg - pos + jnp.float32(margin), 0.0)

    # Mask everything past the logical end of the score vectors (lane padding,
    # partial boundary blocks, and clamped "wasted" grid steps) via the global
    # flat element index of each position.
    base_row = (p * steps_per_part + i) * block_rows
    row_ids = base_row + jax.lax.broadcasted_iota(jnp.int32, hinge.shape, 0)
    lane_ids = jax.lax.broadcasted_iota(jnp.int32, hinge.shape, 1)
    valid = (row_ids * LANE + lane_ids) < n_valid

    acc_ref[...] += jnp.where(valid, hinge, 0.0)   # pure VPU work per step

    @pl.when(i == pl.num_programs(1) - 1)
    def _():
        # Single cross-lane reduction per partition.
        out_ref[...] = jnp.sum(acc_ref[...]).reshape(1, 1, 1)


def margin_ranking_loss(positive_scores, negative_scores, margin, *,
                        block_rows=DEFAULT_BLOCK_ROWS):
    """Pallas TPU margin ranking loss with target = +1, reduction = 'mean'."""
    assert positive_scores.shape == negative_scores.shape
    assert positive_scores.ndim == 1
    assert block_rows % 8 == 0
    n = int(positive_scores.shape[0])
    if n == 0:
        return jnp.float32(0.0)

    # Lane alignment: the (rows, 128) view is a zero-copy reshape when n is a
    # multiple of 128 (the common case); otherwise pad by < 128 elements.
    rem = n % LANE
    if rem:
        pad = LANE - rem
        positive_scores = jnp.pad(positive_scores, (0, pad))
        negative_scores = jnp.pad(negative_scores, (0, pad))
    rows = positive_scores.shape[0] // LANE
    pos2d = positive_scores.reshape(rows, LANE)
    neg2d = negative_scores.reshape(rows, LANE)

    if rows <= block_rows:
        blk_rows = rows                       # one block covers everything
        total_steps = 1
    else:
        blk_rows = block_rows
        total_steps = pl.cdiv(rows, blk_rows)

    # Split the reduction into two independent partitions so both TensorCores
    # are used on v7x (harmless / sequential on single-TC chips).
    n_parts = 2 if total_steps >= 2 else 1
    steps_per_part = pl.cdiv(total_steps, n_parts)
    last_block = total_steps - 1

    def in_map(p, i):
        # Clamp the (few) padding steps of the ragged partition onto the last
        # real block; the in-kernel mask zeroes their contribution.
        return (jnp.minimum(p * steps_per_part + i, last_block), 0)

    kernel = functools.partial(
        _margin_ranking_kernel,
        margin=float(margin), n_valid=n,
        block_rows=blk_rows, steps_per_part=steps_per_part)

    partials = pl.pallas_call(
        kernel,
        out_shape=jax.ShapeDtypeStruct((n_parts, 1, 1), jnp.float32),
        grid_spec=pltpu.PrefetchScalarGridSpec(
            num_scalar_prefetch=0,
            grid=(n_parts, steps_per_part),
            in_specs=[
                pl.BlockSpec((blk_rows, LANE), in_map),
                pl.BlockSpec((blk_rows, LANE), in_map),
            ],
            out_specs=pl.BlockSpec((1, 1, 1), lambda p, i: (p, 0, 0)),
            scratch_shapes=[pltpu.VMEM((blk_rows, LANE), jnp.float32)],
        ),
        compiler_params=pltpu.CompilerParams(
            dimension_semantics=("parallel", "arbitrary")),
    )(pos2d, neg2d)

    # Tiny cross-partition combine + mean outside the kernel.
    return jnp.sum(partials) / jnp.float32(n)


class MarginRankingLoss:
    """JAX/Pallas port of kgpy.loss.MarginRankingLoss (target = +1, mean reduce)."""

    def __init__(self, margin):
        self.margin = margin

    def forward(self, **kwargs):
        positive_scores = kwargs["positive_scores"]
        negative_scores = kwargs["negative_scores"]
        # target = ones_like(positive_scores) is implicit in the hinge sign.
        return margin_ranking_loss(positive_scores, negative_scores, self.margin)

    __call__ = forward


if __name__ == "__main__":
    key = jax.random.PRNGKey(0)
    k1, k2, k3, k4 = jax.random.split(key, 4)

    def ref_loss(pos, neg, margin):
        return jnp.mean(jnp.maximum(
            neg.astype(jnp.float32) - pos.astype(jnp.float32) + margin, 0.0))

    # Case 1: lane-aligned input, single-block fast path (module entry point).
    N = 2048
    pos = jax.random.normal(k1, (N,), dtype=jnp.float32)
    neg = jax.random.normal(k2, (N,), dtype=jnp.float32)
    loss_fn = MarginRankingLoss(margin=1.0)
    loss = jax.block_until_ready(loss_fn(positive_scores=pos, negative_scores=neg))
    assert jnp.allclose(loss, ref_loss(pos, neg, 1.0), atol=1e-5), loss

    # Case 2: unaligned length + tiny block_rows to exercise the multi-step,
    # two-partition, masked-boundary path at a small size.
    N2 = 2348
    pos2 = jax.random.normal(k3, (N2,), dtype=jnp.float32)
    neg2 = jax.random.normal(k4, (N2,), dtype=jnp.float32)
    loss2 = jax.block_until_ready(
        margin_ranking_loss(pos2, neg2, 0.5, block_rows=8))
    assert jnp.allclose(loss2, ref_loss(pos2, neg2, 0.5), atol=1e-5), loss2

    # Case 3: bf16 scores stay bf16 on the DMA, upcast in-kernel.
    pos3 = pos[:512].astype(jnp.bfloat16)
    neg3 = neg[:512].astype(jnp.bfloat16)
    loss3 = jax.block_until_ready(margin_ranking_loss(pos3, neg3, 1.0))
    assert jnp.allclose(loss3, ref_loss(pos3, neg3, 1.0), atol=1e-4), loss3

    print("KERNEL_OK")
</pallas_src>

<mosaic_0001>
module attributes {stable_mosaic.version = 11 : i64} {
  func.func @_margin_ranking_kernel(%arg0: i32, %arg1: i32, %arg2: memref<16x128xf32, #tpu.memory_space<vmem>>, %arg3: memref<16x128xf32, #tpu.memory_space<vmem>>, %arg4: memref<1x1x1xf32, #tpu.memory_space<vmem>>, %arg5: memref<16x128xf32, #tpu.memory_space<vmem>>) attributes {dimension_semantics = [#tpu.dimension_semantics<parallel>, #tpu.dimension_semantics<arbitrary>], iteration_bounds = array<i64: 1, 1>, scalar_prefetch = 0 : i64, scratch_operands = 1 : i64, tpu.core_type = #tpu.core_type<tc>, window_params = [{transform_indices = @transform_0, window_bounds = array<i64: 16, 128>}, {transform_indices = @transform_1, window_bounds = array<i64: 16, 128>}, {transform_indices = @transform_2, window_bounds = array<i64: 1, 1, 1>}]} {
    %c0_i32 = arith.constant 0 : i32
    %0 = arith.cmpi eq, %arg1, %c0_i32 : i32
    %1 = arith.extui %0 : i1 to i32
    %c0_i32_0 = arith.constant 0 : i32
    %2 = arith.cmpi ne, %1, %c0_i32_0 : i32
    scf.if %2 {
      %cst_12 = arith.constant 0.000000e+00 : f32
      %30 = vector.broadcast %cst_12 : f32 to vector<16x128xf32>
      %c0_13 = arith.constant 0 : index
      %c0_14 = arith.constant 0 : index
      %31 = vector.load %arg5[%c0_13, %c0_14] : memref<16x128xf32, #tpu.memory_space<vmem>>, vector<16x128xf32>
      tpu.vector_store %arg5[%c0_13, %c0_14], %30 {strides = array<i32>} : memref<16x128xf32, #tpu.memory_space<vmem>>, vector<16x128xf32>,
    } else {
    }
    %c0 = arith.constant 0 : index
    %c0_1 = arith.constant 0 : index
    %3 = vector.load %arg2[%c0, %c0_1] : memref<16x128xf32, #tpu.memory_space<vmem>>, vector<16x128xf32>
    %c0_2 = arith.constant 0 : index
    %c0_3 = arith.constant 0 : index
    %4 = vector.load %arg3[%c0_2, %c0_3] : memref<16x128xf32, #tpu.memory_space<vmem>>, vector<16x128xf32>
    %5 = arith.subf %4, %3 : vector<16x128xf32>
    %cst = arith.constant 1.000000e+00 : f32
    %6 = vector.broadcast %cst : f32 to vector<16x128xf32>
    %7 = arith.addf %5, %6 : vector<16x128xf32>
    %cst_4 = arith.constant 0.000000e+00 : f32
    %8 = vector.broadcast %cst_4 : f32 to vector<16x128xf32>
    %9 = arith.maximumf %7, %8 : vector<16x128xf32>
    %c1_i32 = arith.constant 1 : i32
    %10 = arith.muli %arg0, %c1_i32 : i32
    %11 = arith.addi %10, %arg1 : i32
    %c16_i32 = arith.constant 16 : i32
    %12 = arith.muli %11, %c16_i32 : i32
    %13 = tpu.iota {dimensions = array<i32: 0>} : vector<16x128xi32>
    %14 = vector.broadcast %12 : i32 to vector<16x128xi32>
    %15 = arith.addi %14, %13 : vector<16x128xi32>
    %16 = tpu.iota {dimensions = array<i32: 1>} : vector<16x128xi32>
    %c128_i32 = arith.constant 128 : i32
    %17 = vector.broadcast %c128_i32 : i32 to vector<16x128xi32>
    %18 = arith.muli %15, %17 : vector<16x128xi32>
    %19 = arith.addi %18, %16 : vector<16x128xi32>
    %c2048_i32 = arith.constant 2048 : i32
    %20 = vector.broadcast %c2048_i32 : i32 to vector<16x128xi32>
    %21 = arith.cmpi slt, %19, %20 : vector<16x128xi32>
    %c0_5 = arith.constant 0 : index
    %c0_6 = arith.constant 0 : index
    %22 = vector.load %arg5[%c0_5, %c0_6] : memref<16x128xf32, #tpu.memory_space<vmem>>, vector<16x128xf32>
    %cst_7 = arith.constant 0.000000e+00 : f32
    %23 = vector.broadcast %cst_7 : f32 to vector<16x128xf32>
    %24 = arith.select %21, %9, %23 : vector<16x128xi1>, vector<16x128xf32>
    %25 = arith.addf %22, %24 : vector<16x128xf32>
    %c0_8 = arith.constant 0 : index
    %c0_9 = arith.constant 0 : index
    %26 = vector.load %arg5[%c0_8, %c0_9] : memref<16x128xf32, #tpu.memory_space<vmem>>, vector<16x128xf32>
    tpu.vector_store %arg5[%c0_8, %c0_9], %25 {strides = array<i32>} : memref<16x128xf32, #tpu.memory_space<vmem>>, vector<16x128xf32>,
    %c0_i32_10 = arith.constant 0 : i32
    %27 = arith.cmpi eq, %arg1, %c0_i32_10 : i32
    %28 = arith.extui %27 : i1 to i32
    %c0_i32_11 = arith.constant 0 : i32
    %29 = arith.cmpi ne, %28, %c0_i32_11 : i32
    scf.if %29 {
      %c0_12 = arith.constant 0 : index
      %c0_13 = arith.constant 0 : index
      %30 = vector.load %arg5[%c0_12, %c0_13] : memref<16x128xf32, #tpu.memory_space<vmem>>, vector<16x128xf32>
      %31 = vector.shape_cast %30 : vector<16x128xf32> to vector<1x16x128xf32>
      %cst_14 = arith.constant dense<0.000000e+00> : vector<1xf32>
      %32 = vector.multi_reduction <add>, %31, %cst_14 [1, 2] : vector<1x16x128xf32> to vector<1xf32>
      %33 = vector.shape_cast %32 : vector<1xf32> to vector<1x1x1xf32>
      %34 = vector.extract %33[0, 0, 0] : f32 from vector<1x1x1xf32>
      %35 = vector.broadcast %34 : f32 to vector<1x1x1xf32>
      %c0_15 = arith.constant 0 : index
      %c0_16 = arith.constant 0 : index
      %c0_17 = arith.constant 0 : index
      %36 = vector.load %arg4[%c0_15, %c0_16, %c0_17] : memref<1x1x1xf32, #tpu.memory_space<vmem>>, vector<1x1x1xf32>
      tpu.vector_store %arg4[%c0_15, %c0_16, %c0_17], %35 {strides = array<i32>} : memref<1x1x1xf32, #tpu.memory_space<vmem>>, vector<1x1x1xf32>,
    } else {
    }
    return
  }
  func.func @transform_0(%arg0: i32, %arg1: i32) -> (i32, i32) {
    %c1_i32 = arith.constant 1 : i32
    %0 = arith.muli %arg0, %c1_i32 : i32
    %1 = arith.addi %0, %arg1 : i32
    %c0_i32 = arith.constant 0 : i32
    %2 = arith.minsi %1, %c0_i32 : i32
    %c0_i32_0 = arith.constant 0 : i32
    %c0_i32_1 = arith.constant 0 : i32
    return %2, %c0_i32_0 : i32, i32
  }
  func.func @transform_1(%arg0: i32, %arg1: i32) -> (i32, i32) {
    %c1_i32 = arith.constant 1 : i32
    %0 = arith.muli %arg0, %c1_i32 : i32
    %1 = arith.addi %0, %arg1 : i32
    %c0_i32 = arith.constant 0 : i32
    %2 = arith.minsi %1, %c0_i32 : i32
    %c0_i32_0 = arith.constant 0 : i32
    %c0_i32_1 = arith.constant 0 : i32
    return %2, %c0_i32_0 : i32, i32
  }
  func.func @transform_2(%arg0: i32, %arg1: i32) -> (i32, i32, i32) {
    %c0_i32 = arith.constant 0 : i32
    %c0_i32_0 = arith.constant 0 : i32
    %c0_i32_1 = arith.constant 0 : i32
    return %arg0, %c0_i32, %c0_i32_0 : i32, i32, i32
  }
}

</mosaic_0001>

<bundles_post_ra>
// kernel: tpu_custom_call.1
= control target key start
LH: loop header
LB: loop body
LE: loop exit
PB: predicated region body
PF: predicated region fallthrough
CT: control target
= control target key end

     0   :  { %7 = vsyncpa [#allocation4], 0  ;;  %s258_s0 = inlined_call_operand.hbm [shape: f32[16,128], index: 0, kind: input, shape index: {}]   ;;  %s259_s1 = inlined_call_operand.hbm [shape: f32[16,128], index: 1, kind: input, shape index: {}]   ;;  %s260_s2 = inlined_call_operand.hbm [shape: f32[1,1,1], index: 2, kind: output, shape index: {}]  }
   0x1   :  { %8 = vsyncpa [#allocation7], 0 }
   0x2   :  { %9 = vsyncpa [#allocation5], 0  ;;  %s20_s11 = sshll.u32 %s258_s0, 4  ;;  %s229_s12 = smov [#allocation3]   ;;  %s21_s11 = int_to_ptr.hbm [resolvable:$true] %s20_s11 }
   0x3   :  { %s22_s13 = sshll.u32 %s229_s12, 4  ;;  %s39_s16 = sshll.u32 %s259_s1, 4  ;;  %s23_s13 = int_to_ptr.vmem [resolvable:$true] %s22_s13  ;;  %s40_s16 = int_to_ptr.hbm [resolvable:$true] %s39_s16 }
   0x4   :  { %s230_s17 = smov 128   ;;  %s231_s18 = smov 8  }
   0x5   :  { %28 = dma.hbm_to_vmem [thread:$0]  %s21_s11, 256, %s23_s13, [#allocation4], %s230_s17, %s230_s17, %s231_s18  }
   0x6   :  { %s232_s19 = smov [#allocation6]  }
   0x7   :  { %s41_s20 = sshll.u32 %s232_s19, 4  ;;  %s42_s20 = int_to_ptr.vmem [resolvable:$true] %s41_s20 }
   0x8   :  { %47 = dma.hbm_to_vmem [thread:$0]  %s40_s16, 256, %s42_s20, [#allocation7], %s230_s17, %s230_s17, %s231_s18  }
   0x9   :  { %223 = dma.done.wait [#allocation4], 256  }
   0xa   :  { %224 = vsyncadd [#allocation4], 4294967040 }
   0xb   :  { %225 = dma.done.wait [#allocation7], 256  }
   0xc   :  { %226 = vsyncadd [#allocation7], 4294967040  ;;  %v82_v0 = vlaneseq  ;;  %v70_v6 = vld [vmem:[#allocation3] sm:$0xff]  ;;  %v71_v7 = vld [vmem:[#allocation3 + $0x8] sm:$0xff]  ;;  %s233_s0 = smov [#allocation8]   ;;  %s129_s23 = sshll.u32 %s260_s2, 4  ;;  %s130_s23 = int_to_ptr.hbm [resolvable:$true] %s129_s23 }
   0xd   :  { %v72_v8 = vld [vmem:[#allocation6] sm:$0xff]  ;;  %v73_v10 = vld [vmem:[#allocation6 + $0x8] sm:$0xff]  ;;  %s127_s1 = sshll.u32 %s233_s0, 4  ;;  %vm120_vm2 = vcmask 0   ;;  %s128_s1 = int_to_ptr.vmem [resolvable:$true] %s127_s1 }
   0xe   :  { %v83_v1 = vshrl.u32 %v82_v0, 7  ;;  %v89_v2 = vand.u32 127, %v82_v0  ;;  %v74_v11 = vsub.f32 %v72_v8, %v70_v6  ;;  %v75_v13 = vsub.f32 %v73_v10, %v71_v7 }
  0x10   :  { %v84_v3 = vadd.s32 8, %v83_v1  ;;  %v90_v4 = vmul.u32 128, %v83_v1  ;;  %v76_v14 = vadd.f32 1.0, %v74_v11  ;;  %v77_v15 = vadd.f32 1.0, %v75_v13 }
  0x12   :  { %v91_v5 = vmul.u32 128, %v84_v3  ;;  %v92_v9 = vadd.s32 %v90_v4, %v89_v2  ;;  %v78_v16 = vmax.f32 %v76_v14, 0.0  ;;  %v79_v17 = vmax.f32 %v77_v15, 0.0 }
  0x14   :  { %v93_v12 = vadd.s32 %v91_v5, %v89_v2  ;;  %vm94_vm0 = vcmp.lt.s32.totalorder %v92_v9, 2048 }
  0x15   :  { %v98_v18 = vsel %vm94_vm0, %v78_v16, 0.0 }
  0x16   :  { %vm95_vm1 = vcmp.lt.s32.totalorder %v93_v12, 2048 }
  0x17   :  { %v99_v19 = vsel %vm95_vm1, %v79_v17, 0.0 }
  0x18   :  { %v109_v20 = vadd.f32 %v99_v19, %v98_v18 }
  0x1a   :  { %110 = vadd.xlane.f32.xlu0 %v109_v20 }
  0x8d   :  { %v111_v21 = vpop.xlane.xlu0 %110 }
  0x8e   :  { %v112_v22 = vrot.slane %v111_v21, 4 }
  0x90   :  { %v113_v23 = vadd.f32 %v112_v22, %v111_v21 }
  0x92   :  { %v114_v24 = vrot.slane %v113_v23, 2 }
  0x94   :  { %v115_v25 = vadd.f32 %v114_v24, %v113_v23 }
  0x96   :  { %v116_v26 = vrot.slane %v115_v25, 1 }
  0x98   :  { %v117_v27 = vadd.f32 %v116_v26, %v115_v25 }
  0x9a   :  { %144 = vpush %v117_v27 }
  0xcb   :  { %s145_s24 = spop %144 }
  0xcc   :  { %v119_v28 = vstv %s145_s24 }
  0xcd   :  { %121 = vst.msk [vmem:[#allocation8] sm:$0x1] %vm120_vm2, %v119_v28 }
  0xce   :  { %132 = dma.vmem_to_hbm [thread:$0]  %s128_s1, 16, %s130_s23, [#allocation5]  }
  0xcf   :  { %227 = dma.done.wait [#allocation5], 16  }
  0xd0   :  { %228 = vsyncadd [#allocation5], 4294967280 }
  0xd1   :  { %137 = vsyncpa [#allocation4], 1 }
  0xd2   :  { %138 = vsyncpa [#allocation7], 1 }
  0xd3   :  { %139 = vsyncpa [#allocation5], 1 }

</bundles_post_ra>
